<compile_context>
chip_gen: v7x
topology: tpu7x:2x2x1
jax: 0.10.0
libtpu: 0.0.40
codegen_flags: <defaults>
</compile_context>

<pallas_src>
import math
import numpy as np
import jax
import jax.numpy as jnp
from jax import lax
from jax.experimental import pallas as pl
from jax.experimental.pallas import tpu as pltpu

# ---------------- config (the cfg.* values of the PyTorch module) ----------------
IN_DIM = 2        # cfg.in_dim (forward uses batch_grid_traj[:, :, 0:2])
HID = 16          # cfg.dim    (GRU hidden size per direction)
T_LAYERS = 2      # cfg.layer_t
NHEAD = 2         # TransformerEncoder default head count in the module
D_MODEL = 2 * HID
HEAD_DIM = D_MODEL // NHEAD
FFN = 128         # nn.TransformerEncoderLayer dim_feedforward
LN_EPS = 1e-5
# cfg.dropout -> 0.0 (deterministic / eval semantics)


# ================================ GRU kernel ================================
# Combined gate layout along the 6H axis: [r_f, r_b, z_f, z_b, n_f, n_b]
def _gru_kernel(xin_ref, wih_ref, bih_ref, whh_ref, bhh_ref, o_ref):
    T, B, _ = o_ref.shape
    H = HID

    # Hoisted input projection: one matmul for all timesteps, both directions.
    gi_all = (jnp.dot(xin_ref[...], wih_ref[...], preferred_element_type=jnp.float32)
              + bih_ref[...])                                        # (T*B, 6H)
    whh = whh_ref[...]                                               # (2H, 6H) block-diag
    bhh = jnp.broadcast_to(bhh_ref[...], (B, 6 * H))                 # hoisted broadcast

    h = jnp.zeros((B, 2 * H), jnp.float32)                           # [hf | hb]
    hs = [None] * T
    # Fully unrolled over time (T static, short). One (B,2H)@(2H,6H) MXU push per step.
    for t in range(T):
        gi = gi_all[t * B:(t + 1) * B]                               # (B, 6H)
        gh = jnp.dot(h, whh, preferred_element_type=jnp.float32) + bhh
        r = jax.nn.sigmoid(gi[:, 0:2 * H] + gh[:, 0:2 * H])
        z = jax.nn.sigmoid(gi[:, 2 * H:4 * H] + gh[:, 2 * H:4 * H])
        n = jnp.tanh(gi[:, 4 * H:6 * H] + r * gh[:, 4 * H:6 * H])
        h = (1.0 - z) * n + z * h
        hs[t] = h

    # Single lane-dense store: out[t] = [hf at time t | hb at time t].
    rows = [jnp.concatenate([hs[t][:, 0:H], hs[T - 1 - t][:, H:2 * H]], axis=-1)
            for t in range(T)]
    o_ref[...] = jnp.stack(rows, axis=0)                             # (T, B, 2H)


def gru_bidir(x, p):
    """x: (B, T, IN_DIM) -> (T, B, 2H)."""
    B, T, _ = x.shape
    x_f = jnp.transpose(x, (1, 0, 2))                   # (T, B, IN_DIM)
    x_b = x_f[::-1]                                      # time-reversed for backward dir
    xin = jnp.concatenate([x_f, x_b], axis=-1).reshape(T * B, 2 * IN_DIM)

    grid_spec = pltpu.PrefetchScalarGridSpec(
        num_scalar_prefetch=0,
        grid=(1,),
        in_specs=[
            pl.BlockSpec((T * B, 2 * IN_DIM), lambda i: (0, 0)),
            pl.BlockSpec((2 * IN_DIM, 6 * HID), lambda i: (0, 0)),
            pl.BlockSpec((1, 6 * HID), lambda i: (0, 0)),
            pl.BlockSpec((2 * HID, 6 * HID), lambda i: (0, 0)),
            pl.BlockSpec((1, 6 * HID), lambda i: (0, 0)),
        ],
        out_specs=pl.BlockSpec((T, B, 2 * HID), lambda i: (0, 0, 0)),
    )
    return pl.pallas_call(
        _gru_kernel,
        out_shape=jax.ShapeDtypeStruct((T, B, 2 * HID), jnp.float32),
        grid_spec=grid_spec,
        compiler_params=pltpu.CompilerParams(dimension_semantics=("arbitrary",)),
    )(xin, p["wih"], p["bih"], p["whh"], p["bhh"])


# ============== fused positional-encoding + 2x encoder-layer kernel ==============
def _encoder_kernel(x_ref, pe_ref, tidc_ref, tidr_ref, posc_ref, posr_ref, keyok_ref,
                    wqkv_ref, bqkv_ref, wo_ref, bo_ref,
                    g1_ref, be1_ref, w1_ref, b1_ref, w2_ref, b2_ref,
                    g2_ref, be2_ref, o_ref):
    D = D_MODEL
    x = x_ref[...] + pe_ref[...]                        # PE add fused (pe already scaled)

    # Mask generated in-kernel once from O(N) row vectors; reused across layers & heads.
    allowed = ((tidc_ref[...] == tidr_ref[...]) &          # same trajectory (block-diag)
               (posr_ref[...] <= posc_ref[...]) &          # causal
               (keyok_ref[...] > 0.5))                     # key not padded
    neg = jnp.float32(-1e30)

    def layer_norm(y, g, b):
        mu = jnp.mean(y, axis=-1, keepdims=True)
        var = jnp.mean((y - mu) * (y - mu), axis=-1, keepdims=True)
        return (y - mu) * lax.rsqrt(var + LN_EPS) * g + b

    for layer in range(T_LAYERS):
        # Fused QKV projection; softmax scale already folded into the Q columns/bias.
        qkv = (jnp.dot(x, wqkv_ref[layer], preferred_element_type=jnp.float32)
               + bqkv_ref[layer])                                     # (N, 3D)
        heads = []
        for h in range(NHEAD):
            q = qkv[:, h * HEAD_DIM:(h + 1) * HEAD_DIM]
            k = qkv[:, D + h * HEAD_DIM:D + (h + 1) * HEAD_DIM]
            v = qkv[:, 2 * D + h * HEAD_DIM:2 * D + (h + 1) * HEAD_DIM]
            s = lax.dot_general(q, k, (((1,), (1,)), ((), ())),
                                preferred_element_type=jnp.float32)   # (N, N)
            s = jnp.where(allowed, s, neg)
            s = s - jnp.max(s, axis=-1, keepdims=True)
            p = jnp.exp(s)
            p = p * pl.reciprocal(jnp.sum(p, axis=-1, keepdims=True), approx=True)
            heads.append(jnp.dot(p, v, preferred_element_type=jnp.float32))
        attn = (jnp.dot(jnp.concatenate(heads, axis=-1), wo_ref[layer],
                        preferred_element_type=jnp.float32) + bo_ref[layer])
        x1 = layer_norm(x + attn, g1_ref[layer], be1_ref[layer])
        hid = jnp.maximum(
            jnp.dot(x1, w1_ref[layer], preferred_element_type=jnp.float32) + b1_ref[layer],
            0.0)
        ff = jnp.dot(hid, w2_ref[layer], preferred_element_type=jnp.float32) + b2_ref[layer]
        x = layer_norm(x1 + ff, g2_ref[layer], be2_ref[layer])
    o_ref[...] = x


def encoder_forward(x_flat, pe_flat, mv, enc):
    N, D = x_flat.shape
    F = enc["w1"].shape[-1]

    def full(shape):
        nd = len(shape)
        return pl.BlockSpec(shape, lambda i, nd=nd: (0,) * nd)

    grid_spec = pltpu.PrefetchScalarGridSpec(
        num_scalar_prefetch=0,
        grid=(1,),
        in_specs=[
            full((N, D)), full((N, D)),
            full((N, 1)), full((1, N)), full((N, 1)), full((1, N)), full((1, N)),
            full((T_LAYERS, D, 3 * D)), full((T_LAYERS, 1, 3 * D)),
            full((T_LAYERS, D, D)), full((T_LAYERS, 1, D)),
            full((T_LAYERS, 1, D)), full((T_LAYERS, 1, D)),
            full((T_LAYERS, D, F)), full((T_LAYERS, 1, F)),
            full((T_LAYERS, F, D)), full((T_LAYERS, 1, D)),
            full((T_LAYERS, 1, D)), full((T_LAYERS, 1, D)),
        ],
        out_specs=full((N, D)),
    )
    return pl.pallas_call(
        _encoder_kernel,
        out_shape=jax.ShapeDtypeStruct((N, D), jnp.float32),
        grid_spec=grid_spec,
        compiler_params=pltpu.CompilerParams(
            dimension_semantics=("arbitrary",),
            vmem_limit_bytes=32 * 1024 * 1024),   # explicit budget, safe on v5e/v6e/v7x
    )(x_flat, pe_flat,
      mv["tid_col"], mv["tid_row"], mv["pos_col"], mv["pos_row"], mv["keyok_row"],
      enc["wqkv"], enc["bqkv"], enc["wo"], enc["bo"],
      enc["g1"], enc["be1"], enc["w1"], enc["b1"], enc["w2"], enc["b2"],
      enc["g2"], enc["be2"])


# ================================== glue =====================================
def positional_encoding_table(L, D):
    pos = np.arange(L, dtype=np.float32)[:, None]
    div = np.exp(np.arange(0, D, 2, dtype=np.float32) * (-math.log(10000.0) / D))
    pe = np.zeros((L, D), dtype=np.float32)
    pe[:, 0::2] = np.sin(pos * div)
    pe[:, 1::2] = np.cos(pos * div)
    return jnp.asarray(pe[None])


def pack_gru_params(p):
    """Build combined block-diagonal GRU weights with gate layout [r_f,r_b,z_f,z_b,n_f,n_b]."""
    H = HID
    wf, wb = np.asarray(p["w_ih_f"]), np.asarray(p["w_ih_b"])
    uf, ub = np.asarray(p["w_hh_f"]), np.asarray(p["w_hh_b"])
    bif, bib = np.asarray(p["b_ih_f"]), np.asarray(p["b_ih_b"])
    bhf, bhb = np.asarray(p["b_hh_f"]), np.asarray(p["b_hh_b"])

    def scatter(dst, src, row_sl, direction):
        for g in range(3):                                   # 0=r, 1=z, 2=n
            off = (2 * g + (1 if direction == "b" else 0)) * H
            dst[row_sl, off:off + H] = src[:, g * H:(g + 1) * H]

    wih = np.zeros((2 * IN_DIM, 6 * H), np.float32)
    scatter(wih, wf, slice(0, IN_DIM), "f")
    scatter(wih, wb, slice(IN_DIM, 2 * IN_DIM), "b")
    whh = np.zeros((2 * H, 6 * H), np.float32)
    scatter(whh, uf, slice(0, H), "f")
    scatter(whh, ub, slice(H, 2 * H), "b")
    bih = np.zeros((1, 6 * H), np.float32)
    scatter(bih, bif, slice(0, 1), "f")
    scatter(bih, bib, slice(0, 1), "b")
    bhh = np.zeros((1, 6 * H), np.float32)
    scatter(bhh, bhf, slice(0, 1), "f")
    scatter(bhh, bhb, slice(0, 1), "b")
    return dict(wih=jnp.asarray(wih), bih=jnp.asarray(bih),
                whh=jnp.asarray(whh), bhh=jnp.asarray(bhh))


def pack_encoder_params(layers):
    """Stack per-layer weights; fold 1/sqrt(head_dim) into the Q columns of the fused QKV."""
    D = D_MODEL
    scale = 1.0 / math.sqrt(HEAD_DIM)
    wqkv, bqkv = [], []
    for lp in layers:
        w = np.asarray(lp["wqkv"]).copy()
        b = np.asarray(lp["bqkv"]).copy()
        w[:, 0:D] *= scale
        b[:, 0:D] *= scale
        wqkv.append(w)
        bqkv.append(b)
    return dict(
        wqkv=jnp.asarray(np.stack(wqkv)), bqkv=jnp.asarray(np.stack(bqkv)),
        wo=jnp.stack([lp["wo"] for lp in layers]),
        bo=jnp.stack([lp["bo"] for lp in layers]),
        g1=jnp.stack([lp["g1"] for lp in layers]),
        be1=jnp.stack([lp["be1"] for lp in layers]),
        w1=jnp.stack([lp["w1"] for lp in layers]),
        b1=jnp.stack([lp["b1"] for lp in layers]),
        w2=jnp.stack([lp["w2"] for lp in layers]),
        b2=jnp.stack([lp["b2"] for lp in layers]),
        g2=jnp.stack([lp["g2"] for lp in layers]),
        be2=jnp.stack([lp["be2"] for lp in layers]),
    )


def gru_transformer_clip_forward(grid_batch_tensor, grid_batchs_traj_len,
                                 traj_grid_lens, params):
    # traj_grid_lens: host numpy (defines static shapes, like torch.max(traj_grid_lens))
    x2 = grid_batch_tensor[:, :, 0:2]
    B, T, _ = x2.shape
    out_tbd = gru_bidir(x2, params["gru"])                              # (T, B, 2H)
    grid_vecs = out_tbd[grid_batchs_traj_len - 1, jnp.arange(B), :]     # (B, 2H)

    lens = np.asarray(traj_grid_lens, dtype=np.int64)
    NT = int(lens.shape[0])
    L = int(lens.max())
    N = NT * L
    offs = np.concatenate([[0], np.cumsum(lens)[:-1]]).astype(np.int64)
    pos = np.arange(L)[None, :]
    valid = pos < lens[:, None]                                         # (NT, L)
    gather_idx = np.where(valid, offs[:, None] + pos, 0)
    traj_seq = jnp.where(jnp.asarray(valid)[:, :, None],
                         grid_vecs[jnp.asarray(gather_idx)], 0.0)       # (NT, L, D)

    # O(N) row vectors for in-kernel mask generation (no N^2 mask DMA).
    traj_id = np.repeat(np.arange(NT), L).astype(np.float32)
    p_in = np.tile(np.arange(L), NT).astype(np.float32)
    keyok = (p_in < np.repeat(lens, L).astype(np.float32)).astype(np.float32)
    mv = dict(tid_col=jnp.asarray(traj_id[:, None]), tid_row=jnp.asarray(traj_id[None, :]),
              pos_col=jnp.asarray(p_in[:, None]), pos_row=jnp.asarray(p_in[None, :]),
              keyok_row=jnp.asarray(keyok[None, :]))

    pe_np = np.asarray(positional_encoding_table(L, D_MODEL))[0]        # (L, D)
    pe_flat = jnp.asarray(np.tile(pe_np, (NT, 1))) * params["pe_weight"][0, 0]

    x_flat = traj_seq.reshape(N, D_MODEL)
    out_flat = encoder_forward(x_flat, pe_flat, mv, params["encoder"])
    return out_flat.reshape(NT, L, D_MODEL)


def init_params(key):
    ks = jax.random.split(key, 32)
    it = iter(ks)

    def u(shape, scale):
        return jax.random.uniform(next(it), shape, jnp.float32, -scale, scale)

    s = 1.0 / math.sqrt(HID)
    gru_raw = dict(
        w_ih_f=u((IN_DIM, 3 * HID), s), w_hh_f=u((HID, 3 * HID), s),
        b_ih_f=u((1, 3 * HID), s), b_hh_f=u((1, 3 * HID), s),
        w_ih_b=u((IN_DIM, 3 * HID), s), w_hh_b=u((HID, 3 * HID), s),
        b_ih_b=u((1, 3 * HID), s), b_hh_b=u((1, 3 * HID), s),
    )
    sd = 1.0 / math.sqrt(D_MODEL)
    sf = 1.0 / math.sqrt(FFN)
    layers = []
    for _ in range(T_LAYERS):
        layers.append(dict(
            wqkv=u((D_MODEL, 3 * D_MODEL), sd), bqkv=u((1, 3 * D_MODEL), sd),
            wo=u((D_MODEL, D_MODEL), sd), bo=u((1, D_MODEL), sd),
            g1=jnp.ones((1, D_MODEL), jnp.float32), be1=jnp.zeros((1, D_MODEL), jnp.float32),
            w1=u((D_MODEL, FFN), sd), b1=u((1, FFN), sd),
            w2=u((FFN, D_MODEL), sf), b2=u((1, D_MODEL), sf),
            g2=jnp.ones((1, D_MODEL), jnp.float32), be2=jnp.zeros((1, D_MODEL), jnp.float32),
        ))
    return dict(gru_raw=gru_raw, gru=pack_gru_params(gru_raw),
                layers=layers, encoder=pack_encoder_params(layers),
                pe_weight=jnp.ones((1, 1), jnp.float32))


# ======================== pure numpy reference (check) =======================
def _np(a):
    return np.asarray(a, dtype=np.float32)


def ref_forward(grid_batch_tensor, grid_batchs_traj_len, traj_grid_lens, params):
    x = _np(grid_batch_tensor)[:, :, 0:2]
    p = {k: _np(v) for k, v in params["gru_raw"].items()}
    B, T, _ = x.shape
    H = HID

    def sigmoid(a):
        return 1.0 / (1.0 + np.exp(-a))

    def run_dir(wih, whh, bih, bhh, reverse):
        hs = np.zeros((B, T, H), np.float32)
        h = np.zeros((B, H), np.float32)
        ts = range(T - 1, -1, -1) if reverse else range(T)
        for t in ts:
            gi = x[:, t, :] @ wih + bih
            gh = h @ whh + bhh
            r = sigmoid(gi[:, :H] + gh[:, :H])
            z = sigmoid(gi[:, H:2 * H] + gh[:, H:2 * H])
            n = np.tanh(gi[:, 2 * H:] + r * gh[:, 2 * H:])
            h = (1 - z) * n + z * h
            hs[:, t, :] = h
        return hs

    out = np.concatenate([
        run_dir(p["w_ih_f"], p["w_hh_f"], p["b_ih_f"], p["b_hh_f"], False),
        run_dir(p["w_ih_b"], p["w_hh_b"], p["b_ih_b"], p["b_hh_b"], True)], axis=-1)

    lens_b = np.asarray(grid_batchs_traj_len)
    grid_vecs = out[np.arange(B), lens_b - 1, :]
    lens = np.asarray(traj_grid_lens)
    NT, L = len(lens), int(lens.max())
    D = out.shape[-1]
    traj_seq = np.zeros((NT, L, D), np.float32)
    posn = 0
    for i, n in enumerate(lens):
        traj_seq[i, :n] = grid_vecs[posn:posn + n]
        posn += n
    pad = np.arange(L)[None, :] >= lens[:, None]

    pe = np.asarray(positional_encoding_table(L, D))[0]
    xx = traj_seq + pe[None] * float(np.asarray(params["pe_weight"])[0, 0])

    def layer_norm(y, g, b):
        mu = y.mean(-1, keepdims=True)
        var = ((y - mu) ** 2).mean(-1, keepdims=True)
        return (y - mu) / np.sqrt(var + LN_EPS) * g + b

    causal = np.triu(np.ones((L, L), bool), k=1)
    for lp in params["layers"]:
        qkv = xx @ _np(lp["wqkv"]) + _np(lp["bqkv"])
        q, k, v = qkv[..., :D], qkv[..., D:2 * D], qkv[..., 2 * D:]
        heads = []
        for h in range(NHEAD):
            sl = slice(h * HEAD_DIM, (h + 1) * HEAD_DIM)
            s = np.einsum("bld,bmd->blm", q[..., sl], k[..., sl]) / math.sqrt(HEAD_DIM)
            s = np.where(causal[None] | pad[:, None, :], -1e30, s)
            s = s - s.max(-1, keepdims=True)
            e = np.exp(s)
            a = e / e.sum(-1, keepdims=True)
            heads.append(np.einsum("blm,bmd->bld", a, v[..., sl]))
        attn = np.concatenate(heads, -1) @ _np(lp["wo"]) + _np(lp["bo"])
        x1 = layer_norm(xx + attn, _np(lp["g1"]), _np(lp["be1"]))
        ff = np.maximum(x1 @ _np(lp["w1"]) + _np(lp["b1"]), 0) @ _np(lp["w2"]) + _np(lp["b2"])
        xx = layer_norm(x1 + ff, _np(lp["g2"]), _np(lp["be2"]))
    return xx


# ==================================== main ===================================
if __name__ == "__main__":
    key = jax.random.PRNGKey(0)
    kparam, kx = jax.random.split(key)
    params = init_params(kparam)

    B, T, F_IN = 8, 8, 4
    grid_batch_tensor = jax.random.normal(kx, (B, T, F_IN), jnp.float32)
    grid_batchs_traj_len = jnp.asarray([5, 8, 3, 6, 2, 7, 4, 8], jnp.int32)  # last valid step per grid seq
    traj_grid_lens = np.asarray([3, 2, 3], np.int64)                          # sums to B = 8

    out = gru_transformer_clip_forward(grid_batch_tensor, grid_batchs_traj_len,
                                       traj_grid_lens, params)
    out = jax.block_until_ready(out)

    ref = ref_forward(np.asarray(grid_batch_tensor), np.asarray(grid_batchs_traj_len),
                      traj_grid_lens, params)
    assert out.shape == (len(traj_grid_lens), int(traj_grid_lens.max()), D_MODEL)
    np.testing.assert_allclose(np.asarray(out), ref, rtol=2e-2, atol=2e-2)
    print("KERNEL_OK")
</pallas_src>

<mosaic_0001>
module attributes {stable_mosaic.version = 11 : i64} {
  func.func @_gru_kernel(%arg0: i32, %arg1: memref<64x4xf32, #tpu.memory_space<vmem>>, %arg2: memref<4x96xf32, #tpu.memory_space<vmem>>, %arg3: memref<1x96xf32, #tpu.memory_space<vmem>>, %arg4: memref<32x96xf32, #tpu.memory_space<vmem>>, %arg5: memref<1x96xf32, #tpu.memory_space<vmem>>, %arg6: memref<8x8x32xf32, #tpu.memory_space<vmem>>) attributes {dimension_semantics = [#tpu.dimension_semantics<arbitrary>], iteration_bounds = array<i64: 1>, scalar_prefetch = 0 : i64, scratch_operands = 0 : i64, tpu.core_type = #tpu.core_type<tc>, window_params = [{pipeline_mode = #tpu.pipeline_mode<synchronous>, transform_indices = @transform_0, window_bounds = array<i64: 64, 4>}, {pipeline_mode = #tpu.pipeline_mode<synchronous>, transform_indices = @transform_1, window_bounds = array<i64: 4, 96>}, {pipeline_mode = #tpu.pipeline_mode<synchronous>, transform_indices = @transform_2, window_bounds = array<i64: 1, 96>}, {pipeline_mode = #tpu.pipeline_mode<synchronous>, transform_indices = @transform_3, window_bounds = array<i64: 32, 96>}, {pipeline_mode = #tpu.pipeline_mode<synchronous>, transform_indices = @transform_4, window_bounds = array<i64: 1, 96>}, {pipeline_mode = #tpu.pipeline_mode<synchronous>, transform_indices = @transform_5, window_bounds = array<i64: 8, 8, 32>}]} {
    %c0 = arith.constant 0 : index
    %c0_0 = arith.constant 0 : index
    %0 = vector.load %arg1[%c0, %c0_0] : memref<64x4xf32, #tpu.memory_space<vmem>>, vector<64x4xf32>
    %c0_1 = arith.constant 0 : index
    %c0_2 = arith.constant 0 : index
    %1 = vector.load %arg2[%c0_1, %c0_2] : memref<4x96xf32, #tpu.memory_space<vmem>>, vector<4x96xf32>
    %cst = arith.constant dense<0.000000e+00> : vector<64x96xf32>
    %2 = tpu.matmul %0, %1, %cst {dimension_numbers = #tpu.dot_dimension_numbers<[1], [0], [0], [1], [0, 0, 1, 1], [], []>} : vector<64x4xf32>, vector<4x96xf32>, vector<64x96xf32> -> vector<64x96xf32>
    %c0_3 = arith.constant 0 : index
    %c0_4 = arith.constant 0 : index
    %3 = vector.load %arg3[%c0_3, %c0_4] : memref<1x96xf32, #tpu.memory_space<vmem>>, vector<1x96xf32>
    %4 = vector.broadcast %3 : vector<1x96xf32> to vector<64x96xf32>
    %5 = arith.addf %2, %4 : vector<64x96xf32>
    %c0_5 = arith.constant 0 : index
    %c0_6 = arith.constant 0 : index
    %6 = vector.load %arg4[%c0_5, %c0_6] : memref<32x96xf32, #tpu.memory_space<vmem>>, vector<32x96xf32>
    %c0_7 = arith.constant 0 : index
    %c0_8 = arith.constant 0 : index
    %7 = vector.load %arg5[%c0_7, %c0_8] : memref<1x96xf32, #tpu.memory_space<vmem>>, vector<1x96xf32>
    %8 = vector.shape_cast %7 : vector<1x96xf32> to vector<1x96xf32>
    %9 = vector.broadcast %8 : vector<1x96xf32> to vector<8x96xf32>
    %cst_9 = arith.constant 0.000000e+00 : f32
    %10 = vector.broadcast %cst_9 : f32 to vector<8x32xf32>
    %11 = vector.extract_strided_slice %5 {offsets = [0, 0], sizes = [8, 96], strides = [1, 1]} : vector<64x96xf32> to vector<8x96xf32>
    %cst_10 = arith.constant dense<0.000000e+00> : vector<8x96xf32>
    %12 = tpu.matmul %10, %6, %cst_10 {dimension_numbers = #tpu.dot_dimension_numbers<[1], [0], [0], [1], [0, 0, 1, 1], [], []>} : vector<8x32xf32>, vector<32x96xf32>, vector<8x96xf32> -> vector<8x96xf32>
    %13 = arith.addf %12, %9 : vector<8x96xf32>
    %14 = vector.extract_strided_slice %11 {offsets = [0, 0], sizes = [8, 32], strides = [1, 1]} : vector<8x96xf32> to vector<8x32xf32>
    %15 = vector.extract_strided_slice %13 {offsets = [0, 0], sizes = [8, 32], strides = [1, 1]} : vector<8x96xf32> to vector<8x32xf32>
    %16 = arith.addf %14, %15 : vector<8x32xf32>
    %17 = arith.negf %16 : vector<8x32xf32>
    %18 = math.exp %17 : vector<8x32xf32>
    %cst_11 = arith.constant 1.000000e+00 : f32
    %19 = vector.broadcast %cst_11 : f32 to vector<8x32xf32>
    %20 = arith.addf %19, %18 : vector<8x32xf32>
    %21 = arith.divf %19, %20 : vector<8x32xf32>
    %22 = vector.extract_strided_slice %11 {offsets = [0, 32], sizes = [8, 32], strides = [1, 1]} : vector<8x96xf32> to vector<8x32xf32>
    %23 = vector.extract_strided_slice %13 {offsets = [0, 32], sizes = [8, 32], strides = [1, 1]} : vector<8x96xf32> to vector<8x32xf32>
    %24 = arith.addf %22, %23 : vector<8x32xf32>
    %25 = arith.negf %24 : vector<8x32xf32>
    %26 = math.exp %25 : vector<8x32xf32>
    %cst_12 = arith.constant 1.000000e+00 : f32
    %27 = vector.broadcast %cst_12 : f32 to vector<8x32xf32>
    %28 = arith.addf %27, %26 : vector<8x32xf32>
    %29 = arith.divf %27, %28 : vector<8x32xf32>
    %30 = vector.extract_strided_slice %11 {offsets = [0, 64], sizes = [8, 32], strides = [1, 1]} : vector<8x96xf32> to vector<8x32xf32>
    %31 = vector.extract_strided_slice %13 {offsets = [0, 64], sizes = [8, 32], strides = [1, 1]} : vector<8x96xf32> to vector<8x32xf32>
    %32 = arith.mulf %21, %31 : vector<8x32xf32>
    %33 = arith.addf %30, %32 : vector<8x32xf32>
    %34 = math.tanh %33 : vector<8x32xf32>
    %cst_13 = arith.constant 1.000000e+00 : f32
    %35 = vector.broadcast %cst_13 : f32 to vector<8x32xf32>
    %36 = arith.subf %35, %29 : vector<8x32xf32>
    %37 = arith.mulf %36, %34 : vector<8x32xf32>
    %38 = arith.mulf %29, %10 : vector<8x32xf32>
    %39 = arith.addf %37, %38 : vector<8x32xf32>
    %40 = vector.extract_strided_slice %5 {offsets = [8, 0], sizes = [8, 96], strides = [1, 1]} : vector<64x96xf32> to vector<8x96xf32>
    %cst_14 = arith.constant dense<0.000000e+00> : vector<8x96xf32>
    %41 = tpu.matmul %39, %6, %cst_14 {dimension_numbers = #tpu.dot_dimension_numbers<[1], [0], [0], [1], [0, 0, 1, 1], [], []>} : vector<8x32xf32>, vector<32x96xf32>, vector<8x96xf32> -> vector<8x96xf32>
    %42 = arith.addf %41, %9 : vector<8x96xf32>
    %43 = vector.extract_strided_slice %40 {offsets = [0, 0], sizes = [8, 32], strides = [1, 1]} : vector<8x96xf32> to vector<8x32xf32>
    %44 = vector.extract_strided_slice %42 {offsets = [0, 0], sizes = [8, 32], strides = [1, 1]} : vector<8x96xf32> to vector<8x32xf32>
    %45 = arith.addf %43, %44 : vector<8x32xf32>
    %46 = arith.negf %45 : vector<8x32xf32>
    %47 = math.exp %46 : vector<8x32xf32>
    %cst_15 = arith.constant 1.000000e+00 : f32
    %48 = vector.broadcast %cst_15 : f32 to vector<8x32xf32>
    %49 = arith.addf %48, %47 : vector<8x32xf32>
    %50 = arith.divf %48, %49 : vector<8x32xf32>
    %51 = vector.extract_strided_slice %40 {offsets = [0, 32], sizes = [8, 32], strides = [1, 1]} : vector<8x96xf32> to vector<8x32xf32>
    %52 = vector.extract_strided_slice %42 {offsets = [0, 32], sizes = [8, 32], strides = [1, 1]} : vector<8x96xf32> to vector<8x32xf32>
    %53 = arith.addf %51, %52 : vector<8x32xf32>
    %54 = arith.negf %53 : vector<8x32xf32>
    %55 = math.exp %54 : vector<8x32xf32>
    %cst_16 = arith.constant 1.000000e+00 : f32
    %56 = vector.broadcast %cst_16 : f32 to vector<8x32xf32>
    %57 = arith.addf %56, %55 : vector<8x32xf32>
    %58 = arith.divf %56, %57 : vector<8x32xf32>
    %59 = vector.extract_strided_slice %40 {offsets = [0, 64], sizes = [8, 32], strides = [1, 1]} : vector<8x96xf32> to vector<8x32xf32>
    %60 = vector.extract_strided_slice %42 {offsets = [0, 64], sizes = [8, 32], strides = [1, 1]} : vector<8x96xf32> to vector<8x32xf32>
    %61 = arith.mulf %50, %60 : vector<8x32xf32>
    %62 = arith.addf %59, %61 : vector<8x32xf32>
    %63 = math.tanh %62 : vector<8x32xf32>
    %cst_17 = arith.constant 1.000000e+00 : f32
    %64 = vector.broadcast %cst_17 : f32 to vector<8x32xf32>
    %65 = arith.subf %64, %58 : vector<8x32xf32>
    %66 = arith.mulf %65, %63 : vector<8x32xf32>
    %67 = arith.mulf %58, %39 : vector<8x32xf32>
    %68 = arith.addf %66, %67 : vector<8x32xf32>
    %69 = vector.extract_strided_slice %5 {offsets = [16, 0], sizes = [8, 96], strides = [1, 1]} : vector<64x96xf32> to vector<8x96xf32>
    %cst_18 = arith.constant dense<0.000000e+00> : vector<8x96xf32>
    %70 = tpu.matmul %68, %6, %cst_18 {dimension_numbers = #tpu.dot_dimension_numbers<[1], [0], [0], [1], [0, 0, 1, 1], [], []>} : vector<8x32xf32>, vector<32x96xf32>, vector<8x96xf32> -> vector<8x96xf32>
    %71 = arith.addf %70, %9 : vector<8x96xf32>
    %72 = vector.extract_strided_slice %69 {offsets = [0, 0], sizes = [8, 32], strides = [1, 1]} : vector<8x96xf32> to vector<8x32xf32>
    %73 = vector.extract_strided_slice %71 {offsets = [0, 0], sizes = [8, 32], strides = [1, 1]} : vector<8x96xf32> to vector<8x32xf32>
    %74 = arith.addf %72, %73 : vector<8x32xf32>
    %75 = arith.negf %74 : vector<8x32xf32>
    %76 = math.exp %75 : vector<8x32xf32>
    %cst_19 = arith.constant 1.000000e+00 : f32
    %77 = vector.broadcast %cst_19 : f32 to vector<8x32xf32>
    %78 = arith.addf %77, %76 : vector<8x32xf32>
    %79 = arith.divf %77, %78 : vector<8x32xf32>
    %80 = vector.extract_strided_slice %69 {offsets = [0, 32], sizes = [8, 32], strides = [1, 1]} : vector<8x96xf32> to vector<8x32xf32>
    %81 = vector.extract_strided_slice %71 {offsets = [0, 32], sizes = [8, 32], strides = [1, 1]} : vector<8x96xf32> to vector<8x32xf32>
    %82 = arith.addf %80, %81 : vector<8x32xf32>
    %83 = arith.negf %82 : vector<8x32xf32>
    %84 = math.exp %83 : vector<8x32xf32>
    %cst_20 = arith.constant 1.000000e+00 : f32
    %85 = vector.broadcast %cst_20 : f32 to vector<8x32xf32>
    %86 = arith.addf %85, %84 : vector<8x32xf32>
    %87 = arith.divf %85, %86 : vector<8x32xf32>
    %88 = vector.extract_strided_slice %69 {offsets = [0, 64], sizes = [8, 32], strides = [1, 1]} : vector<8x96xf32> to vector<8x32xf32>
    %89 = vector.extract_strided_slice %71 {offsets = [0, 64], sizes = [8, 32], strides = [1, 1]} : vector<8x96xf32> to vector<8x32xf32>
    %90 = arith.mulf %79, %89 : vector<8x32xf32>
    %91 = arith.addf %88, %90 : vector<8x32xf32>
    %92 = math.tanh %91 : vector<8x32xf32>
    %cst_21 = arith.constant 1.000000e+00 : f32
    %93 = vector.broadcast %cst_21 : f32 to vector<8x32xf32>
    %94 = arith.subf %93, %87 : vector<8x32xf32>
    %95 = arith.mulf %94, %92 : vector<8x32xf32>
    %96 = arith.mulf %87, %68 : vector<8x32xf32>
    %97 = arith.addf %95, %96 : vector<8x32xf32>
    %98 = vector.extract_strided_slice %5 {offsets = [24, 0], sizes = [8, 96], strides = [1, 1]} : vector<64x96xf32> to vector<8x96xf32>
    %cst_22 = arith.constant dense<0.000000e+00> : vector<8x96xf32>
    %99 = tpu.matmul %97, %6, %cst_22 {dimension_numbers = #tpu.dot_dimension_numbers<[1], [0], [0], [1], [0, 0, 1, 1], [], []>} : vector<8x32xf32>, vector<32x96xf32>, vector<8x96xf32> -> vector<8x96xf32>
    %100 = arith.addf %99, %9 : vector<8x96xf32>
    %101 = vector.extract_strided_slice %98 {offsets = [0, 0], sizes = [8, 32], strides = [1, 1]} : vector<8x96xf32> to vector<8x32xf32>
    %102 = vector.extract_strided_slice %100 {offsets = [0, 0], sizes = [8, 32], strides = [1, 1]} : vector<8x96xf32> to vector<8x32xf32>
    %103 = arith.addf %101, %102 : vector<8x32xf32>
    %104 = arith.negf %103 : vector<8x32xf32>
    %105 = math.exp %104 : vector<8x32xf32>
    %cst_23 = arith.constant 1.000000e+00 : f32
    %106 = vector.broadcast %cst_23 : f32 to vector<8x32xf32>
    %107 = arith.addf %106, %105 : vector<8x32xf32>
    %108 = arith.divf %106, %107 : vector<8x32xf32>
    %109 = vector.extract_strided_slice %98 {offsets = [0, 32], sizes = [8, 32], strides = [1, 1]} : vector<8x96xf32> to vector<8x32xf32>
    %110 = vector.extract_strided_slice %100 {offsets = [0, 32], sizes = [8, 32], strides = [1, 1]} : vector<8x96xf32> to vector<8x32xf32>
    %111 = arith.addf %109, %110 : vector<8x32xf32>
    %112 = arith.negf %111 : vector<8x32xf32>
    %113 = math.exp %112 : vector<8x32xf32>
    %cst_24 = arith.constant 1.000000e+00 : f32
    %114 = vector.broadcast %cst_24 : f32 to vector<8x32xf32>
    %115 = arith.addf %114, %113 : vector<8x32xf32>
    %116 = arith.divf %114, %115 : vector<8x32xf32>
    %117 = vector.extract_strided_slice %98 {offsets = [0, 64], sizes = [8, 32], strides = [1, 1]} : vector<8x96xf32> to vector<8x32xf32>
    %118 = vector.extract_strided_slice %100 {offsets = [0, 64], sizes = [8, 32], strides = [1, 1]} : vector<8x96xf32> to vector<8x32xf32>
    %119 = arith.mulf %108, %118 : vector<8x32xf32>
    %120 = arith.addf %117, %119 : vector<8x32xf32>
    %121 = math.tanh %120 : vector<8x32xf32>
    %cst_25 = arith.constant 1.000000e+00 : f32
    %122 = vector.broadcast %cst_25 : f32 to vector<8x32xf32>
    %123 = arith.subf %122, %116 : vector<8x32xf32>
    %124 = arith.mulf %123, %121 : vector<8x32xf32>
    %125 = arith.mulf %116, %97 : vector<8x32xf32>
    %126 = arith.addf %124, %125 : vector<8x32xf32>
    %127 = vector.extract_strided_slice %5 {offsets = [32, 0], sizes = [8, 96], strides = [1, 1]} : vector<64x96xf32> to vector<8x96xf32>
    %cst_26 = arith.constant dense<0.000000e+00> : vector<8x96xf32>
    %128 = tpu.matmul %126, %6, %cst_26 {dimension_numbers = #tpu.dot_dimension_numbers<[1], [0], [0], [1], [0, 0, 1, 1], [], []>} : vector<8x32xf32>, vector<32x96xf32>, vector<8x96xf32> -> vector<8x96xf32>
    %129 = arith.addf %128, %9 : vector<8x96xf32>
    %130 = vector.extract_strided_slice %127 {offsets = [0, 0], sizes = [8, 32], strides = [1, 1]} : vector<8x96xf32> to vector<8x32xf32>
    %131 = vector.extract_strided_slice %129 {offsets = [0, 0], sizes = [8, 32], strides = [1, 1]} : vector<8x96xf32> to vector<8x32xf32>
    %132 = arith.addf %130, %131 : vector<8x32xf32>
    %133 = arith.negf %132 : vector<8x32xf32>
    %134 = math.exp %133 : vector<8x32xf32>
    %cst_27 = arith.constant 1.000000e+00 : f32
    %135 = vector.broadcast %cst_27 : f32 to vector<8x32xf32>
    %136 = arith.addf %135, %134 : vector<8x32xf32>
    %137 = arith.divf %135, %136 : vector<8x32xf32>
    %138 = vector.extract_strided_slice %127 {offsets = [0, 32], sizes = [8, 32], strides = [1, 1]} : vector<8x96xf32> to vector<8x32xf32>
    %139 = vector.extract_strided_slice %129 {offsets = [0, 32], sizes = [8, 32], strides = [1, 1]} : vector<8x96xf32> to vector<8x32xf32>
    %140 = arith.addf %138, %139 : vector<8x32xf32>
    %141 = arith.negf %140 : vector<8x32xf32>
    %142 = math.exp %141 : vector<8x32xf32>
    %cst_28 = arith.constant 1.000000e+00 : f32
    %143 = vector.broadcast %cst_28 : f32 to vector<8x32xf32>
    %144 = arith.addf %143, %142 : vector<8x32xf32>
    %145 = arith.divf %143, %144 : vector<8x32xf32>
    %146 = vector.extract_strided_slice %127 {offsets = [0, 64], sizes = [8, 32], strides = [1, 1]} : vector<8x96xf32> to vector<8x32xf32>
    %147 = vector.extract_strided_slice %129 {offsets = [0, 64], sizes = [8, 32], strides = [1, 1]} : vector<8x96xf32> to vector<8x32xf32>
    %148 = arith.mulf %137, %147 : vector<8x32xf32>
    %149 = arith.addf %146, %148 : vector<8x32xf32>
    %150 = math.tanh %149 : vector<8x32xf32>
    %cst_29 = arith.constant 1.000000e+00 : f32
    %151 = vector.broadcast %cst_29 : f32 to vector<8x32xf32>
    %152 = arith.subf %151, %145 : vector<8x32xf32>
    %153 = arith.mulf %152, %150 : vector<8x32xf32>
    %154 = arith.mulf %145, %126 : vector<8x32xf32>
    %155 = arith.addf %153, %154 : vector<8x32xf32>
    %156 = vector.extract_strided_slice %5 {offsets = [40, 0], sizes = [8, 96], strides = [1, 1]} : vector<64x96xf32> to vector<8x96xf32>
    %cst_30 = arith.constant dense<0.000000e+00> : vector<8x96xf32>
    %157 = tpu.matmul %155, %6, %cst_30 {dimension_numbers = #tpu.dot_dimension_numbers<[1], [0], [0], [1], [0, 0, 1, 1], [], []>} : vector<8x32xf32>, vector<32x96xf32>, vector<8x96xf32> -> vector<8x96xf32>
    %158 = arith.addf %157, %9 : vector<8x96xf32>
    %159 = vector.extract_strided_slice %156 {offsets = [0, 0], sizes = [8, 32], strides = [1, 1]} : vector<8x96xf32> to vector<8x32xf32>
    %160 = vector.extract_strided_slice %158 {offsets = [0, 0], sizes = [8, 32], strides = [1, 1]} : vector<8x96xf32> to vector<8x32xf32>
    %161 = arith.addf %159, %160 : vector<8x32xf32>
    %162 = arith.negf %161 : vector<8x32xf32>
    %163 = math.exp %162 : vector<8x32xf32>
    %cst_31 = arith.constant 1.000000e+00 : f32
    %164 = vector.broadcast %cst_31 : f32 to vector<8x32xf32>
    %165 = arith.addf %164, %163 : vector<8x32xf32>
    %166 = arith.divf %164, %165 : vector<8x32xf32>
    %167 = vector.extract_strided_slice %156 {offsets = [0, 32], sizes = [8, 32], strides = [1, 1]} : vector<8x96xf32> to vector<8x32xf32>
    %168 = vector.extract_strided_slice %158 {offsets = [0, 32], sizes = [8, 32], strides = [1, 1]} : vector<8x96xf32> to vector<8x32xf32>
    %169 = arith.addf %167, %168 : vector<8x32xf32>
    %170 = arith.negf %169 : vector<8x32xf32>
    %171 = math.exp %170 : vector<8x32xf32>
    %cst_32 = arith.constant 1.000000e+00 : f32
    %172 = vector.broadcast %cst_32 : f32 to vector<8x32xf32>
    %173 = arith.addf %172, %171 : vector<8x32xf32>
    %174 = arith.divf %172, %173 : vector<8x32xf32>
    %175 = vector.extract_strided_slice %156 {offsets = [0, 64], sizes = [8, 32], strides = [1, 1]} : vector<8x96xf32> to vector<8x32xf32>
    %176 = vector.extract_strided_slice %158 {offsets = [0, 64], sizes = [8, 32], strides = [1, 1]} : vector<8x96xf32> to vector<8x32xf32>
    %177 = arith.mulf %166, %176 : vector<8x32xf32>
    %178 = arith.addf %175, %177 : vector<8x32xf32>
    %179 = math.tanh %178 : vector<8x32xf32>
    %cst_33 = arith.constant 1.000000e+00 : f32
    %180 = vector.broadcast %cst_33 : f32 to vector<8x32xf32>
    %181 = arith.subf %180, %174 : vector<8x32xf32>
    %182 = arith.mulf %181, %179 : vector<8x32xf32>
    %183 = arith.mulf %174, %155 : vector<8x32xf32>
    %184 = arith.addf %182, %183 : vector<8x32xf32>
    %185 = vector.extract_strided_slice %5 {offsets = [48, 0], sizes = [8, 96], strides = [1, 1]} : vector<64x96xf32> to vector<8x96xf32>
    %cst_34 = arith.constant dense<0.000000e+00> : vector<8x96xf32>
    %186 = tpu.matmul %184, %6, %cst_34 {dimension_numbers = #tpu.dot_dimension_numbers<[1], [0], [0], [1], [0, 0, 1, 1], [], []>} : vector<8x32xf32>, vector<32x96xf32>, vector<8x96xf32> -> vector<8x96xf32>
    %187 = arith.addf %186, %9 : vector<8x96xf32>
    %188 = vector.extract_strided_slice %185 {offsets = [0, 0], sizes = [8, 32], strides = [1, 1]} : vector<8x96xf32> to vector<8x32xf32>
    %189 = vector.extract_strided_slice %187 {offsets = [0, 0], sizes = [8, 32], strides = [1, 1]} : vector<8x96xf32> to vector<8x32xf32>
    %190 = arith.addf %188, %189 : vector<8x32xf32>
    %191 = arith.negf %190 : vector<8x32xf32>
    %192 = math.exp %191 : vector<8x32xf32>
    %cst_35 = arith.constant 1.000000e+00 : f32
    %193 = vector.broadcast %cst_35 : f32 to vector<8x32xf32>
    %194 = arith.addf %193, %192 : vector<8x32xf32>
    %195 = arith.divf %193, %194 : vector<8x32xf32>
    %196 = vector.extract_strided_slice %185 {offsets = [0, 32], sizes = [8, 32], strides = [1, 1]} : vector<8x96xf32> to vector<8x32xf32>
    %197 = vector.extract_strided_slice %187 {offsets = [0, 32], sizes = [8, 32], strides = [1, 1]} : vector<8x96xf32> to vector<8x32xf32>
    %198 = arith.addf %196, %197 : vector<8x32xf32>
    %199 = arith.negf %198 : vector<8x32xf32>
    %200 = math.exp %199 : vector<8x32xf32>
    %cst_36 = arith.constant 1.000000e+00 : f32
    %201 = vector.broadcast %cst_36 : f32 to vector<8x32xf32>
    %202 = arith.addf %201, %200 : vector<8x32xf32>
    %203 = arith.divf %201, %202 : vector<8x32xf32>
    %204 = vector.extract_strided_slice %185 {offsets = [0, 64], sizes = [8, 32], strides = [1, 1]} : vector<8x96xf32> to vector<8x32xf32>
    %205 = vector.extract_strided_slice %187 {offsets = [0, 64], sizes = [8, 32], strides = [1, 1]} : vector<8x96xf32> to vector<8x32xf32>
    %206 = arith.mulf %195, %205 : vector<8x32xf32>
    %207 = arith.addf %204, %206 : vector<8x32xf32>
    %208 = math.tanh %207 : vector<8x32xf32>
    %cst_37 = arith.constant 1.000000e+00 : f32
    %209 = vector.broadcast %cst_37 : f32 to vector<8x32xf32>
    %210 = arith.subf %209, %203 : vector<8x32xf32>
    %211 = arith.mulf %210, %208 : vector<8x32xf32>
    %212 = arith.mulf %203, %184 : vector<8x32xf32>
    %213 = arith.addf %211, %212 : vector<8x32xf32>
    %214 = vector.extract_strided_slice %5 {offsets = [56, 0], sizes = [8, 96], strides = [1, 1]} : vector<64x96xf32> to vector<8x96xf32>
    %cst_38 = arith.constant dense<0.000000e+00> : vector<8x96xf32>
    %215 = tpu.matmul %213, %6, %cst_38 {dimension_numbers = #tpu.dot_dimension_numbers<[1], [0], [0], [1], [0, 0, 1, 1], [], []>} : vector<8x32xf32>, vector<32x96xf32>, vector<8x96xf32> -> vector<8x96xf32>
    %216 = arith.addf %215, %9 : vector<8x96xf32>
    %217 = vector.extract_strided_slice %214 {offsets = [0, 0], sizes = [8, 32], strides = [1, 1]} : vector<8x96xf32> to vector<8x32xf32>
    %218 = vector.extract_strided_slice %216 {offsets = [0, 0], sizes = [8, 32], strides = [1, 1]} : vector<8x96xf32> to vector<8x32xf32>
    %219 = arith.addf %217, %218 : vector<8x32xf32>
    %220 = arith.negf %219 : vector<8x32xf32>
    %221 = math.exp %220 : vector<8x32xf32>
    %cst_39 = arith.constant 1.000000e+00 : f32
    %222 = vector.broadcast %cst_39 : f32 to vector<8x32xf32>
    %223 = arith.addf %222, %221 : vector<8x32xf32>
    %224 = arith.divf %222, %223 : vector<8x32xf32>
    %225 = vector.extract_strided_slice %214 {offsets = [0, 32], sizes = [8, 32], strides = [1, 1]} : vector<8x96xf32> to vector<8x32xf32>
    %226 = vector.extract_strided_slice %216 {offsets = [0, 32], sizes = [8, 32], strides = [1, 1]} : vector<8x96xf32> to vector<8x32xf32>
    %227 = arith.addf %225, %226 : vector<8x32xf32>
    %228 = arith.negf %227 : vector<8x32xf32>
    %229 = math.exp %228 : vector<8x32xf32>
    %cst_40 = arith.constant 1.000000e+00 : f32
    %230 = vector.broadcast %cst_40 : f32 to vector<8x32xf32>
    %231 = arith.addf %230, %229 : vector<8x32xf32>
    %232 = arith.divf %230, %231 : vector<8x32xf32>
    %233 = vector.extract_strided_slice %214 {offsets = [0, 64], sizes = [8, 32], strides = [1, 1]} : vector<8x96xf32> to vector<8x32xf32>
    %234 = vector.extract_strided_slice %216 {offsets = [0, 64], sizes = [8, 32], strides = [1, 1]} : vector<8x96xf32> to vector<8x32xf32>
    %235 = arith.mulf %224, %234 : vector<8x32xf32>
    %236 = arith.addf %233, %235 : vector<8x32xf32>
    %237 = math.tanh %236 : vector<8x32xf32>
    %cst_41 = arith.constant 1.000000e+00 : f32
    %238 = vector.broadcast %cst_41 : f32 to vector<8x32xf32>
    %239 = arith.subf %238, %232 : vector<8x32xf32>
    %240 = arith.mulf %239, %237 : vector<8x32xf32>
    %241 = arith.mulf %232, %213 : vector<8x32xf32>
    %242 = arith.addf %240, %241 : vector<8x32xf32>
    %243 = vector.extract_strided_slice %39 {offsets = [0, 0], sizes = [8, 16], strides = [1, 1]} : vector<8x32xf32> to vector<8x16xf32>
    %244 = vector.extract_strided_slice %242 {offsets = [0, 16], sizes = [8, 16], strides = [1, 1]} : vector<8x32xf32> to vector<8x16xf32>
    %245 = tpu.concatenate %243, %244 in 1 : vector<8x16xf32>, vector<8x16xf32> -> vector<8x32xf32>
    %246 = vector.extract_strided_slice %68 {offsets = [0, 0], sizes = [8, 16], strides = [1, 1]} : vector<8x32xf32> to vector<8x16xf32>
    %247 = vector.extract_strided_slice %213 {offsets = [0, 16], sizes = [8, 16], strides = [1, 1]} : vector<8x32xf32> to vector<8x16xf32>
    %248 = tpu.concatenate %246, %247 in 1 : vector<8x16xf32>, vector<8x16xf32> -> vector<8x32xf32>
    %249 = vector.extract_strided_slice %97 {offsets = [0, 0], sizes = [8, 16], strides = [1, 1]} : vector<8x32xf32> to vector<8x16xf32>
    %250 = vector.extract_strided_slice %184 {offsets = [0, 16], sizes = [8, 16], strides = [1, 1]} : vector<8x32xf32> to vector<8x16xf32>
    %251 = tpu.concatenate %249, %250 in 1 : vector<8x16xf32>, vector<8x16xf32> -> vector<8x32xf32>
    %252 = vector.extract_strided_slice %126 {offsets = [0, 0], sizes = [8, 16], strides = [1, 1]} : vector<8x32xf32> to vector<8x16xf32>
    %253 = vector.extract_strided_slice %155 {offsets = [0, 16], sizes = [8, 16], strides = [1, 1]} : vector<8x32xf32> to vector<8x16xf32>
    %254 = tpu.concatenate %252, %253 in 1 : vector<8x16xf32>, vector<8x16xf32> -> vector<8x32xf32>
    %255 = vector.extract_strided_slice %155 {offsets = [0, 0], sizes = [8, 16], strides = [1, 1]} : vector<8x32xf32> to vector<8x16xf32>
    %256 = vector.extract_strided_slice %126 {offsets = [0, 16], sizes = [8, 16], strides = [1, 1]} : vector<8x32xf32> to vector<8x16xf32>
    %257 = tpu.concatenate %255, %256 in 1 : vector<8x16xf32>, vector<8x16xf32> -> vector<8x32xf32>
    %258 = vector.extract_strided_slice %184 {offsets = [0, 0], sizes = [8, 16], strides = [1, 1]} : vector<8x32xf32> to vector<8x16xf32>
    %259 = vector.extract_strided_slice %97 {offsets = [0, 16], sizes = [8, 16], strides = [1, 1]} : vector<8x32xf32> to vector<8x16xf32>
    %260 = tpu.concatenate %258, %259 in 1 : vector<8x16xf32>, vector<8x16xf32> -> vector<8x32xf32>
    %261 = vector.extract_strided_slice %213 {offsets = [0, 0], sizes = [8, 16], strides = [1, 1]} : vector<8x32xf32> to vector<8x16xf32>
    %262 = vector.extract_strided_slice %68 {offsets = [0, 16], sizes = [8, 16], strides = [1, 1]} : vector<8x32xf32> to vector<8x16xf32>
    %263 = tpu.concatenate %261, %262 in 1 : vector<8x16xf32>, vector<8x16xf32> -> vector<8x32xf32>
    %264 = vector.extract_strided_slice %242 {offsets = [0, 0], sizes = [8, 16], strides = [1, 1]} : vector<8x32xf32> to vector<8x16xf32>
    %265 = vector.extract_strided_slice %39 {offsets = [0, 16], sizes = [8, 16], strides = [1, 1]} : vector<8x32xf32> to vector<8x16xf32>
    %266 = tpu.concatenate %264, %265 in 1 : vector<8x16xf32>, vector<8x16xf32> -> vector<8x32xf32>
    %267 = vector.shape_cast %245 : vector<8x32xf32> to vector<1x8x32xf32>
    %268 = vector.shape_cast %248 : vector<8x32xf32> to vector<1x8x32xf32>
    %269 = vector.shape_cast %251 : vector<8x32xf32> to vector<1x8x32xf32>
    %270 = vector.shape_cast %254 : vector<8x32xf32> to vector<1x8x32xf32>
    %271 = vector.shape_cast %257 : vector<8x32xf32> to vector<1x8x32xf32>
    %272 = vector.shape_cast %260 : vector<8x32xf32> to vector<1x8x32xf32>
    %273 = vector.shape_cast %263 : vector<8x32xf32> to vector<1x8x32xf32>
    %274 = vector.shape_cast %266 : vector<8x32xf32> to vector<1x8x32xf32>
    %275 = tpu.concatenate %267, %268, %269, %270, %271, %272, %273, %274 in 0 : vector<1x8x32xf32>, vector<1x8x32xf32>, vector<1x8x32xf32>, vector<1x8x32xf32>, vector<1x8x32xf32>, vector<1x8x32xf32>, vector<1x8x32xf32>, vector<1x8x32xf32> -> vector<8x8x32xf32>
    %c0_42 = arith.constant 0 : index
    %c0_43 = arith.constant 0 : index
    %c0_44 = arith.constant 0 : index
    %276 = vector.load %arg6[%c0_42, %c0_43, %c0_44] : memref<8x8x32xf32, #tpu.memory_space<vmem>>, vector<8x8x32xf32>
    tpu.vector_store %arg6[%c0_42, %c0_43, %c0_44], %275 {strides = array<i32>} : memref<8x8x32xf32, #tpu.memory_space<vmem>>, vector<8x8x32xf32>,
    return
  }
  func.func @transform_0(%arg0: i32) -> (i32, i32) {
    %c0_i32 = arith.constant 0 : i32
    %c0_i32_0 = arith.constant 0 : i32
    %c0_i32_1 = arith.constant 0 : i32
    return %c0_i32, %c0_i32_0 : i32, i32
  }
  func.func @transform_1(%arg0: i32) -> (i32, i32) {
    %c0_i32 = arith.constant 0 : i32
    %c0_i32_0 = arith.constant 0 : i32
    %c0_i32_1 = arith.constant 0 : i32
    return %c0_i32, %c0_i32_0 : i32, i32
  }
  func.func @transform_2(%arg0: i32) -> (i32, i32) {
    %c0_i32 = arith.constant 0 : i32
    %c0_i32_0 = arith.constant 0 : i32
    %c0_i32_1 = arith.constant 0 : i32
    return %c0_i32, %c0_i32_0 : i32, i32
  }
  func.func @transform_3(%arg0: i32) -> (i32, i32) {
    %c0_i32 = arith.constant 0 : i32
    %c0_i32_0 = arith.constant 0 : i32
    %c0_i32_1 = arith.constant 0 : i32
    return %c0_i32, %c0_i32_0 : i32, i32
  }
  func.func @transform_4(%arg0: i32) -> (i32, i32) {
    %c0_i32 = arith.constant 0 : i32
    %c0_i32_0 = arith.constant 0 : i32
    %c0_i32_1 = arith.constant 0 : i32
    return %c0_i32, %c0_i32_0 : i32, i32
  }
  func.func @transform_5(%arg0: i32) -> (i32, i32, i32) {
    %c0_i32 = arith.constant 0 : i32
    %c0_i32_0 = arith.constant 0 : i32
    %c0_i32_1 = arith.constant 0 : i32
    %c0_i32_2 = arith.constant 0 : i32
    return %c0_i32, %c0_i32_0, %c0_i32_1 : i32, i32, i32
  }
}

</mosaic_0001>

<bundles_post_ra>
// kernel: tpu_custom_call.1
= control target key start
LH: loop header
LB: loop body
LE: loop exit
PB: predicated region body
PF: predicated region fallthrough
CT: control target
= control target key end

     0   :  { %vm62_vm0 = vcmask 1043456   ;;  %v1338_v3 = vmov 0.0|0.0   ;;  %vm37_vm1 = vcmask 31744   ;;  %s1596_s0 = inlined_call_operand.vmem [shape: f32[64,4], index: 0, kind: input, shape index: {}]   ;;  %s1597_s1 = inlined_call_operand.vmem [shape: f32[4,96], index: 1, kind: input, shape index: {}]   ;;  %s1598_s2 = inlined_call_operand.vmem [shape: f32[1,96], index: 2, kind: input, shape index: {}]   ;;  %s1599_s3 = inlined_call_operand.vmem [shape: f32[32,96], index: 3, kind: input, shape index: {}]   ;;  %s1600_s4 = inlined_call_operand.vmem [shape: f32[1,96], index: 4, kind: input, shape index: {}]   ;;  %s1601_s5 = inlined_call_operand.hbm [shape: f32[8,8,32], index: 5, kind: output, shape index: {}]  }
   0x1   :  { %v171_v0 = vld [vmem:[%s1599_s3] sm:$0xff]  ;;  %v172_v1 = vld [vmem:[%s1599_s3 + $0x8] sm:$0xff]  ;;  %1210 = vmatprep.subr.bf16.mxu1 %v1338_v3  ;;  %v173_v5 = vld [vmem:[%s1599_s3 + $0x10] sm:$0xff] }
   0x2   :  { %v29_v2 = vld [vmem:[%s1597_s1] sm:$0xf]  ;;  %v1386_v4 = vpack.c.bf16 %v172_v1, %v171_v0  ;;  %v174_v6 = vld [vmem:[%s1599_s3 + $0x18] sm:$0xff]  ;;  %v22_v8 = vld [vmem:[%s1596_s0 + $0x8] sm:$0xff] }
   0x3   :  { %1108 = vmatprep.subr.msk.mxu0 %vm62_vm0, %v29_v2  ;;  %v21_v7 = vld [vmem:[%s1596_s0] sm:$0xff] }
   0x4   :  { %1109 = vmatpush3.msk.msra.mxu0 %vm62_vm0, %v29_v2  ;;  %1110 = vmatprep.mubr.msk.f32.mxu0 %vm37_vm1, %v21_v7 }
   0x5   :  { %10 = vsyncpa [#allocation3], 0  ;;  %1212 = vmatpush3.bf16.msra.mxu1 %v1386_v4  ;;  %v1402_v9 = vpack.c.bf16 %v174_v6, %v173_v5  ;;  %1111 = vmatmul.mubr.msk.f32.vlgmr.msra.gmra.mrb[0].mxu0 %vm37_vm1, %v22_v8  ;;  %vm1339_vm2 = vmmov 0   ;;  %v1340_v10 = vmov 0.0   ;;  %v1425_v13 = vld [vmem:[%s1600_s4] ss:$0 sm:$0xff] }
   0x6   :  { %1213 = vmatprep.subr.bf16.mxu1 %v1338_v3  ;;  %1130 = vmatprep.mubr.msk.f32.mxu1 %vm1339_vm2, %v1340_v10  ;;  %s1341_s7 = smov 64   ;;  %v1432_v17 = vld [vmem:[%s1598_s2] ss:$0 sm:$0xff]  ;;  %s1342_s4 = smov 96   ;;  %vm182_vm3 = vcmask 261120   ;;  %v23_v48 = vld [vmem:[%s1596_s0 + $0x10] sm:$0xff] }
   0x7   :  { %1222 = vmatprep.subr.bf16.mxu0 %v1338_v3  ;;  %v24_v49 = vld [vmem:[%s1596_s0 + $0x18] sm:$0xff]  ;;  %v25_v50 = vld [vmem:[%s1596_s0 + $0x20] sm:$0xff]  ;;  %1113 = vmatprep.mubr.msk.f32.mxu0 %vm37_vm1, %v23_v48  ;;  %v26_v51 = vld [vmem:[%s1596_s0 + $0x28] sm:$0xff]  ;;  %vm994_vm4 = vcmask 130048  }
   0x8   :  { %1224 = vmatpush3.bf16.msra.mxu0 %v1386_v4  ;;  %v27_v52 = vld [vmem:[%s1596_s0 + $0x30] sm:$0xff]  ;;  %v28_v53 = vld [vmem:[%s1596_s0 + $0x38] sm:$0xff]  ;;  %s1343_s0 = smov [#allocation2]  }
   0x9   :  { %1215 = vmatpush3.bf16.msra.mxu1 %v1402_v9  ;;  %1225 = vmatprep.subr.bf16.mxu0 %v1338_v3  ;;  %s1022_s21 = sshll.u32 %s1343_s0, 4  ;;  %s1023_s21 = int_to_ptr.vmem [resolvable:$true] %s1022_s21 }
   0xa   :  { %1216 = vmatprep.subr.bf16.mxu1 %v1338_v3  ;;  %1114 = vmatmul.mubr.msk.f32.gmra.mrb[2].mxu0 %vm37_vm1, %v24_v49  ;;  %s1314_s22 = scalar_lea.vmem %s1023_s21, 1024  ;;  %p1319_p1 = scmp.lt.s32.totalorder %s1023_s21, %s1023_s21 }
   0xb   :  { %1116 = vmatprep.mubr.msk.f32.mxu0 %vm37_vm1, %v25_v50  ;;  %p1315_p0 = scmp.ne.s32.totalorder %s1023_s21, %s1314_s22  ;;  %p1320_p2 = scmp.lt.s32.totalorder %s1314_s22, %s1314_s22 }
   0xc   :  { %1131 = vmatmul.mubr.f32.vlgmr.msra.gmra.mrb[0].mxu1 %v1340_v10  ;;  %1227 = vmatpush3.bf16.msra.mxu0 %v1402_v9 }
   0xd   :  { %1218 = vmatpush3.bf16.msra.mxu1 %v1386_v4  ;;  %1141 = vmatprep.mubr.msk.f32.mxu1 %vm1339_vm2, %v1340_v10  ;;  %p1321_p3 = por %p1320_p2, %p1319_p1 }
   0xe   :  { %1219 = vmatprep.subr.bf16.mxu1 %v1338_v3  ;;  %1234 = vmatprep.subr.bf16.mxu0 %v1338_v3 }
   0xf   :  { %1117 = vmatmul.mubr.msk.f32.gmra.mrb[4].mxu0 %vm37_vm1, %v26_v51  ;;  %p1322_p4 = pnand %p1321_p3, %p1315_p0 }
  0x10   :  { %1119 = vmatprep.mubr.msk.f32.mxu0 %vm37_vm1, %v27_v52 }
  0x11   :  { %1221 = vmatpush3.bf16.msra.mxu1 %v1402_v9 }
  0x12   :  { %1228 = vmatprep.subr.bf16.mxu1 %v1338_v3 }
  0x13   :  { %1120 = vmatmul.mubr.msk.f32.gmra.mrb[6].mxu0 %vm37_vm1, %v28_v53 }
  0x14   :  { %1152 = vmatprep.mubr.msk.f32.mxu0 %vm1339_vm2, %v1340_v10 }
  0xd8   :  { %v1112_v11 = vpop.f32.mrb[0].mxu0 }
  0xd9   :  { %v132_v12 = vpop.f32.mrb[1].mxu0  ;;  %v138_v38 = vadd.f32 %v1112_v11, %v1432_v17 }
  0xda   :  { %v133_v18 = vadd.f32 %v1432_v17, %v132_v12 }
  0xdd   :  { %v1115_v60 = vpop.f32.mrb[2].mxu0 }
  0xde   :  { %v142_v61 = vpop.f32.mrb[3].mxu0 }
  0xdf   :  { %v252_v14 = vpop.f32.mrb[0].mxu1  ;;  %v143_v8 = vadd.f32 %v1432_v17, %v142_v61 }
  0xe0   :  { %v253_v15 = vadd.f32 %v1425_v13, %v252_v14  ;;  %v1132_v16 = vpop.f32.mrb[1].mxu1 }
  0xe2   :  { %264 = vrot.lane.b32.xlu0 %v253_v15, %s1341_s7  ;;  %v256_v19 = vadd.f32 %v253_v15, %v133_v18  ;;  %v1480_v62 = vpop.f32.mrb[4].mxu0 }
  0xe3   :  { %v1482_v63 = vpop.f32.mrb[5].mxu0 }
  0xe4   :  { %v1044_v20 = vmul.f32 -1.442695, %v256_v19  ;;  %v153_v53 = vadd.f32 %v1432_v17, %v1482_v63 }
  0xe6   :  { %1266 = vpow2.f32 %v1044_v20  ;;  %v1484_v0 = vpop.f32.mrb[6].mxu0 }
  0xe7   :  { %v1486_v1 = vpop.f32.mrb[7].mxu0 }
  0xf0   :  { %v1267_v21 = vpop.eup %1266 }
  0xf1   :  { %v260_v22 = vadd.f32 1.0, %v1267_v21 }
  0xf3   :  { %1268 = vrcp.f32 %v260_v22 }
  0xfd   :  { %v1269_v23 = vpop.eup %1268 }
  0xfe   :  { %v274_v29 = vsub.f32 1.0, %v1269_v23  ;;  %v280_v31 = vmul.f32 0.0, %v1269_v23 }
 0x154   :  { %v265_v24 = vpop.permute.xlu0 %264 }
 0x155   :  { %v267_v25 = vmul.f32 %v1269_v23, %v265_v24 }
 0x157   :  { %269 = vrot.lane.b32.xlu0 %v267_v25, %s1341_s7 }
 0x1c9   :  { %v270_v26 = vpop.permute.xlu0 %269 }
 0x1ca   :  { %v272_v27 = vadd.f32 %v270_v26, %v133_v18 }
 0x1cc   :  { %1270 = vtanh.f32 %v272_v27 }
 0x1d6   :  { %v1271_v28 = vpop.eup %1270 }
 0x1d7   :  { %276 = vrot.lane.b32.xlu1 %v1271_v28, %s1342_s4 }
 0x249   :  { %v277_v30 = vpop.permute.xlu1 %276 }
 0x24a   :  { %v279_v32 = vmul.f32 %v277_v30, %v274_v29 }
 0x24c   :  { %v281_v33 = vadd.f32 %v280_v31, %v279_v32  ;;  %v148_v32 = vadd.f32 %v1115_v60, %v1432_v17 }
 0x24e   :  { %283 = vrot.lane.b32.xlu1 %v281_v33, %s1342_s4 }
 0x2c0   :  { %v1438_v34 = vpop.permute.xlu1 %283 }
 0x2c1   :  { %1142 = vmatmul.mubr.msk.f32.vlgmr.msra.gmra.mrb[2].mxu1 %vm182_vm3, %v1438_v34 }
 0x2c2   :  { %1230 = vmatpush3.bf16.msra.mxu1 %v1386_v4  ;;  %1163 = vmatprep.mubr.msk.f32.mxu1 %vm1339_vm2, %v1340_v10 }
 0x2c3   :  { %1231 = vmatprep.subr.bf16.mxu1 %v1338_v3 }
 0x2c6   :  { %1233 = vmatpush3.bf16.msra.mxu1 %v1402_v9 }
 0x2c7   :  { %1240 = vmatprep.subr.bf16.mxu1 %v1338_v3 }
 0x394   :  { %v353_v35 = vpop.f32.mrb[2].mxu1 }
 0x395   :  { %v354_v36 = vadd.f32 %v1425_v13, %v353_v35  ;;  %v1143_v37 = vpop.f32.mrb[3].mxu1 }
 0x397   :  { %365 = vrot.lane.b32.xlu0 %v354_v36, %s1341_s7  ;;  %v357_v39 = vadd.f32 %v354_v36, %v138_v38 }
 0x399   :  { %v1046_v40 = vmul.f32 -1.442695, %v357_v39 }
 0x39b   :  { %1272 = vpow2.f32 %v1046_v40 }
 0x3a5   :  { %v1273_v41 = vpop.eup %1272 }
 0x3a6   :  { %v361_v42 = vadd.f32 1.0, %v1273_v41 }
 0x3a8   :  { %1274 = vrcp.f32 %v361_v42 }
 0x3b2   :  { %v1275_v43 = vpop.eup %1274 }
 0x3b3   :  { %v375_v55 = vsub.f32 1.0, %v1275_v43  ;;  %v381_v57 = vmul.f32 %v1275_v43, %v281_v33 }
 0x409   :  { %v366_v44 = vpop.permute.xlu0 %365 }
 0x40a   :  { %v368_v45 = vmul.f32 %v1275_v43, %v366_v44 }
 0x40c   :  { %370 = vrot.lane.b32.xlu1 %v368_v45, %s1341_s7 }
 0x47e   :  { %v371_v46 = vpop.permute.xlu1 %370 }
 0x47f   :  { %v373_v47 = vadd.f32 %v371_v46, %v138_v38 }
 0x481   :  { %1276 = vtanh.f32 %v373_v47 }
 0x48b   :  { %v1277_v54 = vpop.eup %1276 }
 0x48c   :  { %377 = vrot.lane.b32.xlu0 %v1277_v54, %s1342_s4 }
 0x4fe   :  { %v378_v56 = vpop.permute.xlu0 %377 }
 0x4ff   :  { %v380_v58 = vmul.f32 %v378_v56, %v375_v55 }
 0x501   :  { %v382_v59 = vadd.f32 %v381_v57, %v380_v58 }
 0x503   :  { %384 = vrot.lane.b32.xlu1 %v382_v59, %s1342_s4 }
 0x575   :  { %v1488_v2 = vpop.permute.xlu1 %384 }
 0x576   :  { %1153 = vmatmul.mubr.msk.f32.vlgmr.msra.gmra.mrb[8].mxu0 %vm182_vm3, %v1488_v2 }
 0x577   :  { %1236 = vmatpush3.bf16.msra.mxu0 %v1386_v4  ;;  %1174 = vmatprep.mubr.msk.f32.mxu0 %vm1339_vm2, %v1340_v10 }
 0x578   :  { %1237 = vmatprep.subr.bf16.mxu0 %v1338_v3 }
 0x57b   :  { %1239 = vmatpush3.bf16.msra.mxu0 %v1402_v9 }
 0x57c   :  { %1246 = vmatprep.subr.bf16.mxu0 %v1338_v3 }
 0x649   :  { %v454_v5 = vpop.f32.mrb[8].mxu0 }
 0x64a   :  { %v455_v6 = vadd.f32 %v1425_v13, %v454_v5  ;;  %v1154_v7 = vpop.f32.mrb[9].mxu0 }
 0x64c   :  { %466 = vrot.lane.b32.xlu0 %v455_v6, %s1341_s7  ;;  %v458_v11 = vadd.f32 %v455_v6, %v143_v8 }
 0x64e   :  { %v1048_v12 = vmul.f32 -1.442695, %v458_v11 }
 0x650   :  { %1278 = vpow2.f32 %v1048_v12 }
 0x65a   :  { %v1279_v14 = vpop.eup %1278 }
 0x65b   :  { %v462_v15 = vadd.f32 1.0, %v1279_v14 }
 0x65d   :  { %1280 = vrcp.f32 %v462_v15 }
 0x667   :  { %v1281_v16 = vpop.eup %1280 }
 0x668   :  { %v476_v23 = vsub.f32 1.0, %v1281_v16  ;;  %v482_v25 = vmul.f32 %v1281_v16, %v382_v59 }
 0x6be   :  { %v467_v18 = vpop.permute.xlu0 %466 }
 0x6bf   :  { %v469_v19 = vmul.f32 %v1281_v16, %v467_v18 }
 0x6c1   :  { %471 = vrot.lane.b32.xlu1 %v469_v19, %s1341_s7 }
 0x733   :  { %v472_v20 = vpop.permute.xlu1 %471 }
 0x734   :  { %v474_v21 = vadd.f32 %v472_v20, %v143_v8 }
 0x736   :  { %1282 = vtanh.f32 %v474_v21  ;;  %v158_v21 = vadd.f32 %v1480_v62, %v1432_v17 }
 0x740   :  { %v1283_v22 = vpop.eup %1282 }
 0x741   :  { %478 = vrot.lane.b32.xlu0 %v1283_v22, %s1342_s4 }
 0x7b3   :  { %v479_v24 = vpop.permute.xlu0 %478 }
 0x7b4   :  { %v481_v26 = vmul.f32 %v479_v24, %v476_v23 }
 0x7b6   :  { %v483_v27 = vadd.f32 %v482_v25, %v481_v26 }
 0x7b8   :  { %485 = vrot.lane.b32.xlu1 %v483_v27, %s1342_s4 }
 0x82a   :  { %v1504_v28 = vpop.permute.xlu1 %485 }
 0x82b   :  { %1164 = vmatmul.mubr.msk.f32.vlgmr.msra.gmra.mrb[4].mxu1 %vm182_vm3, %v1504_v28 }
 0x82c   :  { %1242 = vmatpush3.bf16.msra.mxu1 %v1386_v4  ;;  %1185 = vmatprep.mubr.msk.f32.mxu1 %vm1339_vm2, %v1340_v10 }
 0x82d   :  { %1243 = vmatprep.subr.bf16.mxu1 %v1338_v3 }
 0x830   :  { %1245 = vmatpush3.bf16.msra.mxu1 %v1402_v9 }
 0x831   :  { %1252 = vmatprep.subr.bf16.mxu1 %v1338_v3 }
 0x8fe   :  { %v555_v29 = vpop.f32.mrb[4].mxu1 }
 0x8ff   :  { %v556_v30 = vadd.f32 %v1425_v13, %v555_v29  ;;  %v1165_v31 = vpop.f32.mrb[5].mxu1 }
 0x901   :  { %567 = vrot.lane.b32.xlu0 %v556_v30, %s1341_s7  ;;  %v559_v33 = vadd.f32 %v556_v30, %v148_v32 }
 0x903   :  { %v1050_v35 = vmul.f32 -1.442695, %v559_v33 }
 0x905   :  { %1284 = vpow2.f32 %v1050_v35 }
 0x90f   :  { %v1285_v36 = vpop.eup %1284 }
 0x910   :  { %v563_v37 = vadd.f32 1.0, %v1285_v36 }
 0x912   :  { %1286 = vrcp.f32 %v563_v37 }
 0x91c   :  { %v1287_v38 = vpop.eup %1286 }
 0x91d   :  { %v577_v44 = vsub.f32 1.0, %v1287_v38  ;;  %v583_v46 = vmul.f32 %v1287_v38, %v483_v27 }
 0x973   :  { %v568_v39 = vpop.permute.xlu0 %567 }
 0x974   :  { %v570_v40 = vmul.f32 %v1287_v38, %v568_v39 }
 0x976   :  { %572 = vrot.lane.b32.xlu1 %v570_v40, %s1341_s7  ;;  %v163_v40 = vadd.f32 %v1432_v17, %v1486_v1 }
 0x9e8   :  { %v573_v41 = vpop.permute.xlu1 %572 }
 0x9e9   :  { %v575_v42 = vadd.f32 %v573_v41, %v148_v32 }
 0x9eb   :  { %1288 = vtanh.f32 %v575_v42 }
 0x9f5   :  { %v1289_v43 = vpop.eup %1288 }
 0x9f6   :  { %579 = vrot.lane.b32.xlu0 %v1289_v43, %s1342_s4 }
 0xa68   :  { %v580_v45 = vpop.permute.xlu0 %579 }
 0xa69   :  { %v582_v47 = vmul.f32 %v580_v45, %v577_v44 }
 0xa6b   :  { %v584_v48 = vadd.f32 %v583_v46, %v582_v47 }
 0xa6d   :  { %586 = vrot.lane.b32.xlu1 %v584_v48, %s1342_s4 }
 0xadf   :  { %v587_v49 = vpop.permute.xlu1 %586 }
 0xae0   :  { %1175 = vmatmul.mubr.msk.f32.vlgmr.msra.gmra.mrb[10].mxu0 %vm182_vm3, %v587_v49 }
 0xae1   :  { %1248 = vmatpush3.bf16.msra.mxu0 %v1386_v4  ;;  %1196 = vmatprep.mubr.msk.f32.mxu0 %vm1339_vm2, %v1340_v10 }
 0xae2   :  { %1249 = vmatprep.subr.bf16.mxu0 %v1338_v3 }
 0xae5   :  { %1251 = vmatpush3.bf16.msra.mxu0 %v1402_v9 }
 0xbb3   :  { %v656_v50 = vpop.f32.mrb[10].mxu0 }
 0xbb4   :  { %v657_v51 = vadd.f32 %v1425_v13, %v656_v50  ;;  %v1176_v52 = vpop.f32.mrb[11].mxu0 }
 0xbb6   :  { %668 = vrot.lane.b32.xlu0 %v657_v51, %s1341_s7  ;;  %v660_v54 = vadd.f32 %v657_v51, %v153_v53 }
 0xbb8   :  { %v1052_v55 = vmul.f32 -1.442695, %v660_v54 }
 0xbba   :  { %1290 = vpow2.f32 %v1052_v55 }
 0xbc4   :  { %v1291_v56 = vpop.eup %1290 }
 0xbc5   :  { %v664_v57 = vadd.f32 1.0, %v1291_v56 }
 0xbc7   :  { %1292 = vrcp.f32 %v664_v57 }
 0xbd1   :  { %v1293_v58 = vpop.eup %1292 }
 0xbd2   :  { %v678_v7 = vsub.f32 1.0, %v1293_v58  ;;  %v684_v63 = vmul.f32 %v1293_v58, %v584_v48 }
 0xc28   :  { %v669_v59 = vpop.permute.xlu0 %668 }
 0xc29   :  { %v671_v60 = vmul.f32 %v1293_v58, %v669_v59 }
 0xc2b   :  { %673 = vrot.lane.b32.xlu1 %v671_v60, %s1341_s7  ;;  %v168_v60 = vadd.f32 %v1484_v0, %v1432_v17 }
 0xc9d   :  { %v674_v61 = vpop.permute.xlu1 %673 }
 0xc9e   :  { %v676_v5 = vadd.f32 %v674_v61, %v153_v53 }
 0xca0   :  { %1294 = vtanh.f32 %v676_v5 }
 0xcaa   :  { %v1295_v6 = vpop.eup %1294 }
 0xcab   :  { %680 = vrot.lane.b32.xlu0 %v1295_v6, %s1342_s4 }
 0xd1d   :  { %v681_v8 = vpop.permute.xlu0 %680 }
 0xd1e   :  { %v683_v11 = vmul.f32 %v681_v8, %v678_v7 }
 0xd20   :  { %v685_v12 = vadd.f32 %v684_v63, %v683_v11 }
 0xd22   :  { %687 = vrot.lane.b32.xlu1 %v685_v12, %s1342_s4 }
 0xd94   :  { %v688_v14 = vpop.permute.xlu1 %687 }
 0xd95   :  { %v1004_v15 = vsel %vm994_vm4, %v587_v49, %v688_v14  ;;  %v1005_v16 = vsel %vm994_vm4, %v688_v14, %v587_v49  ;;  %1186 = vmatmul.mubr.msk.f32.vlgmr.msra.gmra.mrb[6].mxu1 %vm182_vm3, %v688_v14 }
 0xd96   :  { %1012 = vst.msk [vmem:[#allocation2 + $0x18] sm:$0xff] %vm182_vm3, %v1004_v15  ;;  %1013 = vst.msk [vmem:[#allocation2 + $0x20] sm:$0xff] %vm182_vm3, %v1005_v16  ;;  %1254 = vmatpush3.bf16.msra.mxu1 %v1386_v4  ;;  %1207 = vmatprep.mubr.msk.f32.mxu1 %vm1339_vm2, %v1340_v10 }
 0xd97   :  { %1255 = vmatprep.subr.bf16.mxu1 %v1338_v3 }
 0xd9a   :  { %1257 = vmatpush3.bf16.msra.mxu1 %v1402_v9 }
 0xe68   :  { %v757_v18 = vpop.f32.mrb[6].mxu1 }
 0xe69   :  { %v758_v19 = vadd.f32 %v1425_v13, %v757_v18  ;;  %v1187_v20 = vpop.f32.mrb[7].mxu1 }
 0xe6b   :  { %769 = vrot.lane.b32.xlu0 %v758_v19, %s1341_s7  ;;  %v761_v22 = vadd.f32 %v758_v19, %v158_v21 }
 0xe6d   :  { %v1054_v23 = vmul.f32 -1.442695, %v761_v22 }
 0xe6f   :  { %1296 = vpow2.f32 %v1054_v23 }
 0xe79   :  { %v1297_v4 = vpop.eup %1296 }
 0xe7a   :  { %v765_v24 = vadd.f32 1.0, %v1297_v4 }
 0xe7c   :  { %1298 = vrcp.f32 %v765_v24 }
 0xe86   :  { %v1299_v10 = vpop.eup %1298 }
 0xe87   :  { %v779_v29 = vsub.f32 1.0, %v1299_v10  ;;  %v785_v62 = vmul.f32 %v1299_v10, %v685_v12 }
 0xedd   :  { %v770_v25 = vpop.permute.xlu0 %769 }
 0xede   :  { %v772_v3 = vmul.f32 %v1299_v10, %v770_v25 }
 0xee0   :  { %774 = vrot.lane.b32.xlu1 %v772_v3, %s1341_s7 }
 0xf52   :  { %v775_v9 = vpop.permute.xlu1 %774 }
 0xf53   :  { %v777_v26 = vadd.f32 %v775_v9, %v158_v21 }
 0xf55   :  { %1300 = vtanh.f32 %v777_v26 }
 0xf5f   :  { %v1301_v27 = vpop.eup %1300 }
 0xf60   :  { %781 = vrot.lane.b32.xlu0 %v1301_v27, %s1342_s4 }
 0xfd2   :  { %v782_v30 = vpop.permute.xlu0 %781 }
 0xfd3   :  { %v784_v31 = vmul.f32 %v782_v30, %v779_v29 }
 0xfd5   :  { %v786_v32 = vadd.f32 %v785_v62, %v784_v31 }
 0xfd7   :  { %788 = vrot.lane.b32.xlu1 %v786_v32, %s1342_s4 }
0x1049   :  { %v789_v33 = vpop.permute.xlu1 %788 }
0x104a   :  { %v1001_v35 = vsel %vm994_vm4, %v1504_v28, %v789_v33  ;;  %v1006_v36 = vsel %vm994_vm4, %v789_v33, %v1504_v28  ;;  %1197 = vmatmul.mubr.msk.f32.vlgmr.msra.gmra.mrb[12].mxu0 %vm182_vm3, %v789_v33 }
0x104b   :  { %1011 = vst.msk [vmem:[#allocation2 + $0x10] sm:$0xff] %vm182_vm3, %v1001_v35  ;;  %1014 = vst.msk [vmem:[#allocation2 + $0x28] sm:$0xff] %vm182_vm3, %v1006_v36 }
0x111d   :  { %v858_v37 = vpop.f32.mrb[12].mxu0 }
0x111e   :  { %v859_v38 = vadd.f32 %v1425_v13, %v858_v37  ;;  %v1198_v39 = vpop.f32.mrb[13].mxu0 }
0x1120   :  { %870 = vrot.lane.b32.xlu0 %v859_v38, %s1341_s7  ;;  %v862_v41 = vadd.f32 %v859_v38, %v163_v40 }
0x1122   :  { %v1056_v42 = vmul.f32 -1.442695, %v862_v41 }
0x1124   :  { %1302 = vpow2.f32 %v1056_v42 }
0x112e   :  { %v1303_v43 = vpop.eup %1302 }
0x112f   :  { %v866_v28 = vadd.f32 1.0, %v1303_v43 }
0x1131   :  { %1304 = vrcp.f32 %v866_v28 }
0x113b   :  { %v1305_v44 = vpop.eup %1304 }
0x113c   :  { %v880_v50 = vsub.f32 1.0, %v1305_v44  ;;  %v886_v1 = vmul.f32 %v1305_v44, %v786_v32 }
0x1192   :  { %v871_v45 = vpop.permute.xlu0 %870 }
0x1193   :  { %v873_v46 = vmul.f32 %v1305_v44, %v871_v45 }
0x1195   :  { %875 = vrot.lane.b32.xlu1 %v873_v46, %s1341_s7 }
0x1207   :  { %v876_v47 = vpop.permute.xlu1 %875 }
0x1208   :  { %v878_v48 = vadd.f32 %v876_v47, %v163_v40 }
0x120a   :  { %1306 = vtanh.f32 %v878_v48 }
0x1214   :  { %v1307_v49 = vpop.eup %1306 }
0x1215   :  { %882 = vrot.lane.b32.xlu0 %v1307_v49, %s1342_s4 }
0x1287   :  { %v883_v51 = vpop.permute.xlu0 %882 }
0x1288   :  { %v885_v52 = vmul.f32 %v883_v51, %v880_v50 }
0x128a   :  { %v887_v53 = vadd.f32 %v886_v1, %v885_v52 }
0x128c   :  { %889 = vrot.lane.b32.xlu1 %v887_v53, %s1342_s4 }
0x12fe   :  { %v890_v54 = vpop.permute.xlu1 %889 }
0x12ff   :  { %v998_v55 = vsel %vm994_vm4, %v1488_v2, %v890_v54  ;;  %v1007_v56 = vsel %vm994_vm4, %v890_v54, %v1488_v2  ;;  %1208 = vmatmul.mubr.msk.f32.vlgmr.msra.gmra.mrb[8].mxu1 %vm182_vm3, %v890_v54 }
0x1300   :  { %1010 = vst.msk [vmem:[#allocation2 + $0x8] sm:$0xff] %vm182_vm3, %v998_v55  ;;  %1015 = vst.msk [vmem:[#allocation2 + $0x30] sm:$0xff] %vm182_vm3, %v1007_v56 }
0x13d2   :  { %v959_v57 = vpop.f32.mrb[8].mxu1 }
0x13d3   :  { %v960_v58 = vadd.f32 %v1425_v13, %v959_v57  ;;  %v1209_v59 = vpop.f32.mrb[9].mxu1 }
0x13d5   :  { %971 = vrot.lane.b32.xlu0 %v960_v58, %s1341_s7  ;;  %v963_v61 = vadd.f32 %v960_v58, %v168_v60 }
0x13d7   :  { %v1058_v5 = vmul.f32 -1.442695, %v963_v61 }
0x13d9   :  { %1308 = vpow2.f32 %v1058_v5 }
0x13e3   :  { %v1309_v6 = vpop.eup %1308 }
0x13e4   :  { %v967_v2 = vadd.f32 1.0, %v1309_v6 }
0x13e6   :  { %1310 = vrcp.f32 %v967_v2 }
0x13f0   :  { %v1311_v7 = vpop.eup %1310 }
0x13f1   :  { %v981_v14 = vsub.f32 1.0, %v1311_v7  ;;  %v987_v17 = vmul.f32 %v1311_v7, %v887_v53 }
0x1447   :  { %v972_v8 = vpop.permute.xlu0 %971 }
0x1448   :  { %v974_v63 = vmul.f32 %v1311_v7, %v972_v8 }
0x144a   :  { %976 = vrot.lane.b32.xlu1 %v974_v63, %s1341_s7 }
0x14bc   :  { %v977_v11 = vpop.permute.xlu1 %976 }
0x14bd   :  { %v979_v12 = vadd.f32 %v977_v11, %v168_v60 }
0x14bf   :  { %1312 = vtanh.f32 %v979_v12 }
0x14c9   :  { %v1313_v13 = vpop.eup %1312 }
0x14ca   :  { %983 = vrot.lane.b32.xlu0 %v1313_v13, %s1342_s4 }
0x153c   :  { %v984_v15 = vpop.permute.xlu0 %983 }
0x153d   :  { %v986_v0 = vmul.f32 %v984_v15, %v981_v14 }
0x153f   :  { %v988_v16 = vadd.f32 %v987_v17, %v986_v0 }
0x1541   :  { %991 = vrot.lane.b32.xlu1 %v988_v16, %s1342_s4 }
0x15b3   :  { %v992_v18 = vpop.permute.xlu1 %991 }
0x15b4   :  { %v995_v19 = vsel %vm994_vm4, %v1438_v34, %v992_v18  ;;  %v1008_v20 = vsel %vm994_vm4, %v992_v18, %v1438_v34 }
0x15b5   :  { %1009 = vst.msk [vmem:[#allocation2] sm:$0xff] %vm182_vm3, %v995_v19  ;;  %1016 = vst.msk [vmem:[#allocation2 + $0x38] sm:$0xff] %vm182_vm3, %v1008_v20 }
0x15b6   :  { %1325 = shalt.err (!%p1322_p4)
}
0x15b7   :  { %s1326_s25 = scalar_lea.hbm %s1601_s5, 1024 }
0x15b8   :  { %p1327_p5 = scmp.ne.s32.totalorder %s1601_s5, %s1326_s25  ;;  %p1330_p6 = scmp.lt.u32.totalorder %s1326_s25, %s1601_s5 }
0x15ba   :  { %p1332_p7 = pnand %p1330_p6, %p1327_p5 }
0x15bc   :  { %1335 = shalt.err (!%p1332_p7)
}
0x15bd   :  { %s1344_s1 = smov 128   ;;  %s1345_s30 = smov 8  }
0x15be   :  { %1028 = dma.vmem_to_hbm [thread:$0]  %s1023_s21, 1024, %s1601_s5, [#allocation3], %s1344_s1, %s1344_s1, %s1345_s30  }
0x15bf   :  { %1336 = dma.done.wait [#allocation3], 1024  }
0x15c0   :  { %1337 = vsyncadd [#allocation3], 4294966272 }
0x15c1   :  { %1032 = vsyncpa [#allocation3], 1 }

</bundles_post_ra>
